<compile_context>
chip_gen: v7x
topology: tpu7x:2x2x1
jax: 0.10.0
libtpu: 0.0.40
codegen_flags: <defaults>
</compile_context>

<pallas_src>
import functools

import jax
import jax.numpy as jnp
from jax.experimental import pallas as pl
from jax.experimental.pallas import tpu as pltpu


def _round_up(x, m):
    return (x + m - 1) // m * m


def _flatsum_kernel(tok_ref, emb_ref, out_ref, acc_ref, *, tile_v):
    """One (d_tile, v_tile) grid step.

    tok_ref: (B_pad, L)       int32 -- full token block, resident across grid
    emb_ref: (TILE_V, TILE_D)       -- one vocab/feature tile of the table
    out_ref: (B_pad, TILE_D)  f32   -- output block for this d tile
    acc_ref: (B_pad, TILE_D)  f32   -- VMEM accumulator across the vocab axis
    """
    v = pl.program_id(1)

    @pl.when(v == 0)
    def _init():
        acc_ref[...] = jnp.zeros_like(acc_ref)

    tok = tok_ref[...]                              # (B_pad, L) int32
    emb = emb_ref[...]                              # (TILE_V, TILE_D)
    b_pad, seq_len = tok.shape

    # counts[b, j] = # of non-PAD occurrences of vocab row (v*tile_v + j) in
    # batch b.  V stays on the lane axis; the sum over L is a cheap reduce.
    v_start = v * tile_v
    vocab_ids = jax.lax.broadcasted_iota(
        jnp.int32, (b_pad, seq_len, tile_v), 2) + v_start
    tok3 = tok[:, :, None]
    hit = (tok3 == vocab_ids) & (tok3 != 0)         # PAD (token id 0) masked out
    counts = hit.astype(jnp.float32).sum(axis=1)    # (B_pad, TILE_V)

    # Masked embedding-bag sum for this vocab tile: one MXU matmul, f32 acc.
    # counts are small exact integers; cast to the table dtype so a bf16 table
    # runs the MXU in bf16 (keep counts f32 if L > 256 and the table is bf16).
    acc_ref[...] += jnp.dot(counts.astype(emb.dtype), emb,
                            preferred_element_type=jnp.float32)

    @pl.when(v == pl.num_programs(1) - 1)
    def _finalize():
        out_ref[...] = acc_ref[...].astype(out_ref.dtype)


def flat_sum(trees, embedding_table, mean=False, *, tile_v=512, tile_d=512):
    """JAX/Pallas equivalent of FlatSum.forward.

    trees: integer array (B, ...) -- flattened to (B, L) token ids (< V).
    embedding_table: (V, D).
    Returns (B, D) f32 when mean=False (module default), (B,) f32 when mean=True.
    """
    batch = trees.shape[0]
    tok = trees.reshape(batch, -1).astype(jnp.int32)          # (B, L)
    seq_len = tok.shape[1]
    vocab, dim = embedding_table.shape

    # --- pad to TPU-friendly shapes (lane-dense output, aligned tiles) ------
    b_pad = _round_up(batch, 8)                               # sublane multiple
    d_pad = _round_up(dim, 128)                               # lane multiple
    tile_d = _round_up(min(tile_d, d_pad), 128)
    d_pad = _round_up(d_pad, tile_d)
    tile_v = _round_up(min(tile_v, _round_up(vocab, 8)), 8)
    v_pad = _round_up(vocab, tile_v)

    tok_p = jnp.zeros((b_pad, seq_len), jnp.int32).at[:batch].set(tok)
    emb_p = jnp.zeros((v_pad, d_pad), embedding_table.dtype)
    emb_p = emb_p.at[:vocab, :dim].set(embedding_table)

    grid = (d_pad // tile_d, v_pad // tile_v)                 # (parallel, reduce)

    kernel = functools.partial(_flatsum_kernel, tile_v=tile_v)
    out_p = pl.pallas_call(
        kernel,
        out_shape=jax.ShapeDtypeStruct((b_pad, d_pad), jnp.float32),
        grid_spec=pltpu.PrefetchScalarGridSpec(
            num_scalar_prefetch=0,
            grid=grid,
            in_specs=[
                # tokens: small, resident (constant block index across grid)
                pl.BlockSpec((b_pad, seq_len), lambda d, v: (0, 0)),
                # embedding table: (TILE_V, TILE_D) tiles, double-buffered DMA
                pl.BlockSpec((tile_v, tile_d), lambda d, v: (v, d)),
            ],
            out_specs=pl.BlockSpec((b_pad, tile_d), lambda d, v: (0, d)),
            scratch_shapes=[pltpu.VMEM((b_pad, tile_d), jnp.float32)],
        ),
        compiler_params=pltpu.CompilerParams(
            dimension_semantics=("parallel", "arbitrary"),
            vmem_limit_bytes=32 * 1024 * 1024,
        ),
    )(tok_p, emb_p)

    masked_sum = out_p[:batch, :dim]                          # strip padding
    if mean:
        # Reference: mean(dim=1) then sum(dim=1) -> scalar per batch element.
        return (masked_sum / jnp.float32(seq_len)).sum(axis=1)
    return masked_sum


def _reference(trees, embedding_table, mean=False):
    """Pure-JAX reference mirroring the PyTorch module exactly."""
    batch = trees.shape[0]
    tok = trees.reshape(batch, -1).astype(jnp.int32)          # (B, L)
    reps = embedding_table[tok]                               # (B, L, D)
    reps = jnp.where((tok == 0)[..., None], 0.0, reps)
    if mean:
        reps = reps.mean(axis=1)
    return reps.sum(axis=1)


if __name__ == "__main__":
    key = jax.random.PRNGKey(0)
    k_tok, k_emb = jax.random.split(key)

    batch, height, width = 2, 4, 4            # trees: (B, 4, 4) -> L = 16
    vocab, dim = 32, 32

    trees = jax.random.randint(k_tok, (batch, height, width), 0, vocab,
                               dtype=jnp.int32)
    # Make sure some PAD (0) tokens are present to exercise the mask.
    trees = trees.at[:, 0, 0].set(0)

    embedding_table = jax.random.normal(k_emb, (vocab, dim), dtype=jnp.float32)

    out = flat_sum(trees, embedding_table, mean=False)
    out = jax.block_until_ready(out)
    ref = _reference(trees, embedding_table, mean=False)
    assert out.shape == (batch, dim)
    assert jnp.allclose(out, ref, atol=1e-5, rtol=1e-5), "mismatch (mean=False)"

    out_m = flat_sum(trees, embedding_table, mean=True)
    out_m = jax.block_until_ready(out_m)
    ref_m = _reference(trees, embedding_table, mean=True)
    assert out_m.shape == (batch,)
    assert jnp.allclose(out_m, ref_m, atol=1e-5, rtol=1e-5), "mismatch (mean=True)"

    print("KERNEL_OK")
</pallas_src>

<mosaic_0001>
module attributes {stable_mosaic.version = 11 : i64} {
  func.func @_flatsum_kernel(%arg0: i32, %arg1: i32, %arg2: memref<8x16xi32, #tpu.memory_space<vmem>>, %arg3: memref<32x128xf32, #tpu.memory_space<vmem>>, %arg4: memref<8x128xf32, #tpu.memory_space<vmem>>, %arg5: memref<8x128xf32, #tpu.memory_space<vmem>>) attributes {dimension_semantics = [#tpu.dimension_semantics<parallel>, #tpu.dimension_semantics<arbitrary>], iteration_bounds = array<i64: 1, 1>, scalar_prefetch = 0 : i64, scratch_operands = 1 : i64, tpu.core_type = #tpu.core_type<tc>, window_params = [{pipeline_mode = #tpu.pipeline_mode<synchronous>, transform_indices = @transform_0, window_bounds = array<i64: 8, 16>}, {transform_indices = @transform_1, window_bounds = array<i64: 32, 128>}, {transform_indices = @transform_2, window_bounds = array<i64: 8, 128>}]} {
    %c0_i32 = arith.constant 0 : i32
    %0 = arith.cmpi eq, %arg1, %c0_i32 : i32
    %1 = arith.extui %0 : i1 to i32
    %c0_i32_0 = arith.constant 0 : i32
    %2 = arith.cmpi ne, %1, %c0_i32_0 : i32
    scf.if %2 {
      %cst_12 = arith.constant 0.000000e+00 : f32
      %26 = vector.broadcast %cst_12 : f32 to vector<8x128xf32>
      %c0_13 = arith.constant 0 : index
      %c0_14 = arith.constant 0 : index
      %27 = vector.load %arg5[%c0_13, %c0_14] : memref<8x128xf32, #tpu.memory_space<vmem>>, vector<8x128xf32>
      tpu.vector_store %arg5[%c0_13, %c0_14], %26 {strides = array<i32>} : memref<8x128xf32, #tpu.memory_space<vmem>>, vector<8x128xf32>,
    } else {
    }
    %c0 = arith.constant 0 : index
    %c0_1 = arith.constant 0 : index
    %3 = vector.load %arg2[%c0, %c0_1] : memref<8x16xi32, #tpu.memory_space<vmem>>, vector<8x16xi32>
    %c0_2 = arith.constant 0 : index
    %c0_3 = arith.constant 0 : index
    %4 = vector.load %arg3[%c0_2, %c0_3] : memref<32x128xf32, #tpu.memory_space<vmem>>, vector<32x128xf32>
    %c32_i32 = arith.constant 32 : i32
    %5 = arith.muli %arg1, %c32_i32 : i32
    %6 = tpu.iota {dimensions = array<i32: 2>} : vector<8x16x32xi32>
    %7 = vector.broadcast %5 : i32 to vector<8x16x32xi32>
    %8 = arith.addi %6, %7 : vector<8x16x32xi32>
    %9 = vector.shape_cast %3 : vector<8x16xi32> to vector<8x16x1xi32>
    %10 = vector.broadcast %9 : vector<8x16x1xi32> to vector<8x16x32xi32>
    %11 = arith.cmpi eq, %10, %8 : vector<8x16x32xi32>
    %c0_i32_4 = arith.constant 0 : i32
    %12 = vector.broadcast %c0_i32_4 : i32 to vector<8x16x1xi32>
    %13 = arith.cmpi ne, %9, %12 : vector<8x16x1xi32>
    %14 = vector.broadcast %13 : vector<8x16x1xi1> to vector<8x16x32xi1>
    %15 = arith.andi %11, %14 : vector<8x16x32xi1>
    %16 = arith.extui %15 : vector<8x16x32xi1> to vector<8x16x32xi32>
    %17 = arith.sitofp %16 : vector<8x16x32xi32> to vector<8x16x32xf32>
    %cst = arith.constant dense<0.000000e+00> : vector<8x32xf32>
    %18 = vector.multi_reduction <add>, %17, %cst [1] : vector<8x16x32xf32> to vector<8x32xf32>
    %c0_5 = arith.constant 0 : index
    %c0_6 = arith.constant 0 : index
    %19 = vector.load %arg5[%c0_5, %c0_6] : memref<8x128xf32, #tpu.memory_space<vmem>>, vector<8x128xf32>
    %cst_7 = arith.constant dense<0.000000e+00> : vector<8x128xf32>
    %20 = tpu.matmul %18, %4, %cst_7 {dimension_numbers = #tpu.dot_dimension_numbers<[1], [0], [0], [1], [0, 0, 1, 1], [], []>} : vector<8x32xf32>, vector<32x128xf32>, vector<8x128xf32> -> vector<8x128xf32>
    %21 = arith.addf %19, %20 : vector<8x128xf32>
    %c0_8 = arith.constant 0 : index
    %c0_9 = arith.constant 0 : index
    %22 = vector.load %arg5[%c0_8, %c0_9] : memref<8x128xf32, #tpu.memory_space<vmem>>, vector<8x128xf32>
    tpu.vector_store %arg5[%c0_8, %c0_9], %21 {strides = array<i32>} : memref<8x128xf32, #tpu.memory_space<vmem>>, vector<8x128xf32>,
    %c0_i32_10 = arith.constant 0 : i32
    %23 = arith.cmpi eq, %arg1, %c0_i32_10 : i32
    %24 = arith.extui %23 : i1 to i32
    %c0_i32_11 = arith.constant 0 : i32
    %25 = arith.cmpi ne, %24, %c0_i32_11 : i32
    scf.if %25 {
      %c0_12 = arith.constant 0 : index
      %c0_13 = arith.constant 0 : index
      %26 = vector.load %arg5[%c0_12, %c0_13] : memref<8x128xf32, #tpu.memory_space<vmem>>, vector<8x128xf32>
      %c0_14 = arith.constant 0 : index
      %c0_15 = arith.constant 0 : index
      %27 = vector.load %arg4[%c0_14, %c0_15] : memref<8x128xf32, #tpu.memory_space<vmem>>, vector<8x128xf32>
      tpu.vector_store %arg4[%c0_14, %c0_15], %26 {strides = array<i32>} : memref<8x128xf32, #tpu.memory_space<vmem>>, vector<8x128xf32>,
    } else {
    }
    return
  }
  func.func @transform_0(%arg0: i32, %arg1: i32) -> (i32, i32) {
    %c0_i32 = arith.constant 0 : i32
    %c0_i32_0 = arith.constant 0 : i32
    %c0_i32_1 = arith.constant 0 : i32
    return %c0_i32, %c0_i32_0 : i32, i32
  }
  func.func @transform_1(%arg0: i32, %arg1: i32) -> (i32, i32) {
    %c0_i32 = arith.constant 0 : i32
    return %arg1, %arg0 : i32, i32
  }
  func.func @transform_2(%arg0: i32, %arg1: i32) -> (i32, i32) {
    %c0_i32 = arith.constant 0 : i32
    %c0_i32_0 = arith.constant 0 : i32
    return %c0_i32, %arg0 : i32, i32
  }
}

</mosaic_0001>

<bundles_post_ra>
// kernel: tpu_custom_call.1
= control target key start
LH: loop header
LB: loop body
LE: loop exit
PB: predicated region body
PF: predicated region fallthrough
CT: control target
= control target key end

     0   :  { %7 = vsyncpa [#allocation4], 0  ;;  %s681_s0 = inlined_call_operand.hbm [shape: s32[8,16], index: 0, kind: input, shape index: {}]   ;;  %s682_s1 = inlined_call_operand.hbm [shape: f32[32,128], index: 1, kind: input, shape index: {}]   ;;  %s683_s2 = inlined_call_operand.hbm [shape: f32[8,128], index: 2, kind: output, shape index: {}]  }
   0x1   :  { %8 = vsyncpa [#allocation7], 0 }
   0x2   :  { %9 = vsyncpa [#allocation5], 0  ;;  %s563_s9 = smov [#allocation3]   ;;  %s564_s11 = smov [#allocation6]  }
   0x3   :  { %s16_s10 = sshll.u32 %s563_s9, 4  ;;  %s25_s12 = sshll.u32 %s564_s11, 4  ;;  %s17_s10 = int_to_ptr.vmem [resolvable:$true] %s16_s10  ;;  %s586_s12 = int_to_ptr.vmem [resolvable:$true] %s25_s12 }
   0x4   :  { %s491_s15 = scalar_lea.hbm %s681_s0, 128 }
   0x5   :  { %p492_p0 = scmp.ne.s32.totalorder %s681_s0, %s491_s15  ;;  %p495_p1 = scmp.lt.u32.totalorder %s491_s15, %s681_s0 }
   0x7   :  { %p497_p2 = pnand %p495_p1, %p492_p0 }
   0x9   :  { %500 = shalt.err (!%p497_p2)
}
   0xa   :  { %s501_s20 = scalar_lea.vmem %s17_s10, 128  ;;  %p506_p4 = scmp.lt.s32.totalorder %s17_s10, %s17_s10 }
   0xb   :  { %p502_p3 = scmp.ne.s32.totalorder %s17_s10, %s501_s20  ;;  %p507_p5 = scmp.lt.s32.totalorder %s501_s20, %s501_s20 }
   0xd   :  { %p508_p6 = por %p507_p5, %p506_p4 }
   0xf   :  { %p509_p7 = pnand %p508_p6, %p502_p3 }
  0x11   :  { %512 = shalt.err (!%p509_p7)
}
  0x12   :  { %19 = dma.hbm_to_vmem [thread:$0]  %s681_s0, 128, %s17_s10, [#allocation4]  }
  0x13   :  { %s513_s25 = scalar_lea.hbm %s682_s1, 512 }
  0x14   :  { %p514_p8 = scmp.ne.s32.totalorder %s682_s1, %s513_s25  ;;  %p517_p9 = scmp.lt.u32.totalorder %s513_s25, %s682_s1 }
  0x16   :  { %p519_p10 = pnand %p517_p9, %p514_p8 }
  0x18   :  { %522 = shalt.err (!%p519_p10)
}
  0x19   :  { %s523_s30 = scalar_lea.vmem %s586_s12, 512  ;;  %p528_p12 = scmp.lt.s32.totalorder %s586_s12, %s586_s12 }
  0x1a   :  { %p524_p11 = scmp.ne.s32.totalorder %s586_s12, %s523_s30  ;;  %p529_p13 = scmp.lt.s32.totalorder %s523_s30, %s523_s30 }
  0x1c   :  { %p530_p0 = por %p529_p13, %p528_p12 }
  0x1e   :  { %p531_p1 = pnand %p530_p0, %p524_p11 }
  0x20   :  { %534 = shalt.err (!%p531_p1)
}
  0x21   :  { %s565_s0 = smov 128   ;;  %s566_s3 = smov 8  }
  0x22   :  { %31 = dma.hbm_to_vmem [thread:$0]  %s682_s1, 512, %s586_s12, [#allocation7], %s565_s0, %s565_s0, %s566_s3  }
  0x23   :  { %557 = dma.done.wait [#allocation4], 128  }
  0x24   :  { %558 = vsyncadd [#allocation4], 4294967168 }
  0x25   :  { %559 = dma.done.wait [#allocation7], 512  }
  0x26   :  { %560 = vsyncadd [#allocation7], 4294966784  ;;  %v49_v0 = vlaneseq  ;;  %v43_v4 = vld [vmem:[#allocation3] sm:$0xff]  ;;  %v44_v19 = vld [vmem:[#allocation6] sm:$0xff]  ;;  %v567_v22 = vmov 0.0|0.0   ;;  %vm568_vm0 = vmmov 0  }
  0x27   :  { %v45_v20 = vld [vmem:[#allocation6 + $0x8] sm:$0xff]  ;;  %477 = vmatprep.subr.bf16.mxu0 %v567_v22  ;;  %v46_v23 = vld [vmem:[#allocation6 + $0x10] sm:$0xff]  ;;  %v47_v24 = vld [vmem:[#allocation6 + $0x18] sm:$0xff]  ;;  %v569_v26 = vmov 0.0   ;;  %s570_s1 = smov [#allocation8]  }
  0x28   :  { %v54_v1 = vshrl.u32 %v49_v0, 7  ;;  %v478_v21 = vpack.c.bf16 %v45_v20, %v44_v19  ;;  %v481_v25 = vpack.c.bf16 %v47_v24, %v46_v23  ;;  %474 = vmatprep.mubr.msk.f32.mxu0 %vm568_vm0, %v569_v26  ;;  %v618_v27 = vand.u32 127, %v49_v0  ;;  %s434_s6 = sshll.u32 %s570_s1, 4  ;;  %s435_s6 = int_to_ptr.vmem [resolvable:$true] %s434_s6 }
  0x29   :  { %s535_s7 = scalar_lea.vmem %s435_s6, 128  ;;  %p540_p3 = scmp.lt.s32.totalorder %s435_s6, %s435_s6 }
  0x2a   :  { %v66_v2 = vsub.s32 1, %v54_v1  ;;  %v55_v3 = vsub.s32 0, %v54_v1  ;;  %v77_v7 = vsub.s32 2, %v54_v1  ;;  %v88_v9 = vsub.s32 3, %v54_v1  ;;  %479 = vmatpush3.bf16.msra.mxu0 %v478_v21  ;;  %p536_p2 = scmp.ne.s32.totalorder %s435_s6, %s535_s7  ;;  %p541_p4 = scmp.lt.s32.totalorder %s535_s7, %s535_s7 }
  0x2b   :  { %v99_v11 = vsub.s32 4, %v54_v1  ;;  %v110_v13 = vsub.s32 5, %v54_v1  ;;  %v121_v15 = vsub.s32 6, %v54_v1  ;;  %v132_v17 = vsub.s32 7, %v54_v1  ;;  %480 = vmatprep.subr.bf16.mxu0 %v567_v22 }
  0x2c   :  { %v67_v5 = vrot.slane %v43_v4, %v66_v2  ;;  %v56_v6 = vrot.slane %v43_v4, %v55_v3  ;;  %v78_v8 = vrot.slane %v43_v4, %v77_v7  ;;  %v89_v10 = vrot.slane %v43_v4, %v88_v9  ;;  %p542_p5 = por %p541_p4, %p540_p3 }
  0x2d   :  { %v100_v12 = vrot.slane %v43_v4, %v99_v11  ;;  %v111_v14 = vrot.slane %v43_v4, %v110_v13  ;;  %v122_v16 = vrot.slane %v43_v4, %v121_v15  ;;  %v133_v18 = vrot.slane %v43_v4, %v132_v17 }
  0x2e   :  { %69 = vbcast.lane.b32.xlu1 %v67_v5, 256  ;;  %58 = vbcast.lane.b32.xlu0 %v56_v6, 256  ;;  %p543_p6 = pnand %p542_p5, %p536_p2 }
  0x2f   :  { %482 = vmatpush3.bf16.msra.mxu0 %v481_v25 }
  0x32   :  { %73 = vbcast.lane.b32.xlu1 %v67_v5, 264  ;;  %62 = vbcast.lane.b32.xlu0 %v56_v6, 264 }
  0x36   :  { %84 = vbcast.lane.b32.xlu1 %v78_v8, 264  ;;  %80 = vbcast.lane.b32.xlu0 %v78_v8, 256 }
  0x3a   :  { %95 = vbcast.lane.b32.xlu1 %v89_v10, 264  ;;  %91 = vbcast.lane.b32.xlu0 %v89_v10, 256 }
  0x3e   :  { %106 = vbcast.lane.b32.xlu1 %v100_v12, 264  ;;  %102 = vbcast.lane.b32.xlu0 %v100_v12, 256 }
  0x42   :  { %117 = vbcast.lane.b32.xlu1 %v111_v14, 264  ;;  %113 = vbcast.lane.b32.xlu0 %v111_v14, 256 }
  0x46   :  { %128 = vbcast.lane.b32.xlu1 %v122_v16, 264  ;;  %124 = vbcast.lane.b32.xlu0 %v122_v16, 256 }
  0x4a   :  { %139 = vbcast.lane.b32.xlu1 %v133_v18, 264  ;;  %135 = vbcast.lane.b32.xlu0 %v133_v18, 256 }
  0xa0   :  { %v70_v28 = vpop.permute.xlu1 %69  ;;  %v59_v29 = vpop.permute.xlu0 %58 }
  0xa1   :  { %vm143_vm1 = vcmp.eq.s32.totalorder %v70_v28, %v618_v27  ;;  %vm159_vm2 = vcmp.ne.s32.totalorder %v70_v28, 0  ;;  %vm141_vm6 = vcmp.eq.s32.totalorder %v59_v29, %v618_v27  ;;  %vm157_vm7 = vcmp.ne.s32.totalorder %v59_v29, 0 }
  0xa2   :  { %vm207_vm11 = vmand %vm143_vm1, %vm159_vm2 }
  0xa3   :  { %vm205_vm12 = vmand %vm141_vm6, %vm157_vm7  ;;  %v446_v36 = vsel %vm207_vm11, 1.0, %v569_v26 }
  0xa4   :  { %v74_v30 = vpop.permute.xlu1 %73  ;;  %v63_v31 = vpop.permute.xlu0 %62  ;;  %v444_v38 = vsel %vm205_vm12, 1.0, %v569_v26 }
  0xa5   :  { %vm144_vm3 = vcmp.eq.s32.totalorder %v74_v30, %v618_v27  ;;  %vm160_vm4 = vcmp.ne.s32.totalorder %v74_v30, 0  ;;  %vm142_vm5 = vcmp.eq.s32.totalorder %v63_v31, %v618_v27  ;;  %vm158_vm9 = vcmp.ne.s32.totalorder %v63_v31, 0 }
  0xa6   :  { %vm208_vm8 = vmand %vm144_vm3, %vm160_vm4  ;;  %vm253_vm4 = vcmask 261120  }
  0xa7   :  { %vm206_vm10 = vmand %vm142_vm5, %vm158_vm9  ;;  %v447_v34 = vsel %vm208_vm8, 1.0, %v569_v26  ;;  %v263_v46 = vsel %vm253_vm4, %v446_v36, 0.0  ;;  %v254_v47 = vsel %vm253_vm4, %v444_v38, 0.0 }
  0xa8   :  { %v85_v32 = vpop.permute.xlu1 %84  ;;  %v81_v33 = vpop.permute.xlu0 %80  ;;  %v445_v35 = vsel %vm206_vm10, 1.0, %v569_v26  ;;  %v264_v39 = vsel %vm253_vm4, %v447_v34, 0.0 }
  0xa9   :  { %vm146_vm13 = vcmp.eq.s32.totalorder %v85_v32, %v618_v27  ;;  %vm162_vm14 = vcmp.ne.s32.totalorder %v85_v32, 0  ;;  %vm145_vm0 = vcmp.eq.s32.totalorder %v81_v33, %v618_v27  ;;  %vm161_vm3 = vcmp.ne.s32.totalorder %v81_v33, 0 }
  0xaa   :  { %vm210_vm15 = vmand %vm146_vm13, %vm162_vm14  ;;  %v255_v40 = vsel %vm253_vm4, %v445_v35, 0.0  ;;  %v265_v48 = vadd.f32 %v264_v39, %v263_v46 }
  0xab   :  { %v449_v37 = vsel %vm210_vm15, 1.0, %v569_v26  ;;  %vm209_vm1 = vmand %vm145_vm0, %vm161_vm3  ;;  %v256_v50 = vadd.f32 %v255_v40, %v254_v47 }
  0xac   :  { %v448_v41 = vsel %vm209_vm1, 1.0, %v569_v26  ;;  %v96_v42 = vpop.permute.xlu1 %95  ;;  %v92_v43 = vpop.permute.xlu0 %91  ;;  %v273_v44 = vsel %vm253_vm4, %v449_v37, 0.0  ;;  %v266_v59 = vrot.slane %v265_v48, 4 }
  0xad   :  { %v272_v45 = vsel %vm253_vm4, %v448_v41, 0.0  ;;  %vm148_vm2 = vcmp.eq.s32.totalorder %v96_v42, %v618_v27  ;;  %vm164_vm5 = vcmp.ne.s32.totalorder %v96_v42, 0  ;;  %vm147_vm7 = vcmp.eq.s32.totalorder %v92_v43, %v618_v27 }
  0xae   :  { %vm212_vm6 = vmand %vm148_vm2, %vm164_vm5  ;;  %vm163_vm8 = vcmp.ne.s32.totalorder %v92_v43, 0  ;;  %v274_v51 = vadd.f32 %v273_v44, %v272_v45  ;;  %v257_v60 = vrot.slane %v256_v50, 4  ;;  %v267_v6 = vadd.f32 %v266_v59, %v265_v48 }
  0xaf   :  { %v451_v49 = vsel %vm212_vm6, 1.0, %v569_v26  ;;  %vm211_vm9 = vmand %vm147_vm7, %vm163_vm8 }
  0xb0   :  { %v282_v52 = vsel %vm253_vm4, %v451_v49, 0.0  ;;  %v450_v53 = vsel %vm211_vm9, 1.0, %v569_v26  ;;  %v107_v54 = vpop.permute.xlu1 %106  ;;  %v103_v55 = vpop.permute.xlu0 %102  ;;  %v275_v61 = vrot.slane %v274_v51, 4  ;;  %v258_v7 = vadd.f32 %v257_v60, %v256_v50 }
  0xb1   :  { %v281_v56 = vsel %vm253_vm4, %v450_v53, 0.0  ;;  %vm150_vm10 = vcmp.eq.s32.totalorder %v107_v54, %v618_v27  ;;  %vm166_vm11 = vcmp.ne.s32.totalorder %v107_v54, 0  ;;  %vm149_vm13 = vcmp.eq.s32.totalorder %v103_v55, %v618_v27 }
  0xb2   :  { %v283_v57 = vadd.f32 %v282_v52, %v281_v56  ;;  %vm214_vm12 = vmand %vm150_vm10, %vm166_vm11  ;;  %vm165_vm14 = vcmp.ne.s32.totalorder %v103_v55, 0  ;;  %v276_v8 = vadd.f32 %v275_v61, %v274_v51  ;;  %v268_v19 = vrot.slane %v267_v6, 2 }
  0xb3   :  { %v453_v58 = vsel %vm214_vm12, 1.0, %v569_v26  ;;  %vm213_vm15 = vmand %vm149_vm13, %vm165_vm14  ;;  %v259_v20 = vrot.slane %v258_v7, 2 }
  0xb4   :  { %v291_v62 = vsel %vm253_vm4, %v453_v58, 0.0  ;;  %v118_v63 = vpop.permute.xlu1 %117  ;;  %v114_v0 = vpop.permute.xlu0 %113  ;;  %v452_v1 = vsel %vm213_vm15, 1.0, %v569_v26  ;;  %v284_v2 = vrot.slane %v283_v57, 4  ;;  %v277_v24 = vrot.slane %v276_v8, 2 }
  0xb5   :  { %vm152_vm0 = vcmp.eq.s32.totalorder %v118_v63, %v618_v27  ;;  %vm168_vm3 = vcmp.ne.s32.totalorder %v118_v63, 0  ;;  %v290_v3 = vsel %vm253_vm4, %v452_v1, 0.0  ;;  %vm151_vm2 = vcmp.eq.s32.totalorder %v114_v0, %v618_v27 }
  0xb6   :  { %vm216_vm1 = vmand %vm152_vm0, %vm168_vm3  ;;  %v292_v4 = vadd.f32 %v291_v62, %v290_v3  ;;  %vm167_vm5 = vcmp.ne.s32.totalorder %v114_v0, 0  ;;  %v285_v14 = vadd.f32 %v284_v2, %v283_v57  ;;  %v269_v34 = vadd.f32 %v268_v19, %v267_v6 }
  0xb7   :  { %v455_v5 = vsel %vm216_vm1, 1.0, %v569_v26  ;;  %vm215_vm6 = vmand %vm151_vm2, %vm167_vm5  ;;  %v260_v35 = vadd.f32 %v259_v20, %v258_v7  ;;  %v278_v37 = vadd.f32 %v277_v24, %v276_v8  ;;  %vm335_vm2 = vcmask 1041409  }
  0xb8   :  { %v300_v9 = vsel %vm253_vm4, %v455_v5, 0.0  ;;  %v129_v10 = vpop.permute.xlu1 %128  ;;  %v125_v11 = vpop.permute.xlu0 %124  ;;  %v293_v12 = vrot.slane %v292_v4, 4  ;;  %v454_v13 = vsel %vm215_vm6, 1.0, %v569_v26  ;;  %v286_v29 = vrot.slane %v285_v14, 2 }
  0xb9   :  { %vm154_vm7 = vcmp.eq.s32.totalorder %v129_v10, %v618_v27  ;;  %vm170_vm8 = vcmp.ne.s32.totalorder %v129_v10, 0  ;;  %v299_v15 = vsel %vm253_vm4, %v454_v13, 0.0  ;;  %vm153_vm10 = vcmp.eq.s32.totalorder %v125_v11, %v618_v27 }
  0xba   :  { %vm218_vm9 = vmand %vm154_vm7, %vm170_vm8  ;;  %v294_v16 = vadd.f32 %v293_v12, %v292_v4  ;;  %v301_v17 = vadd.f32 %v300_v9, %v299_v15  ;;  %vm169_vm11 = vcmp.ne.s32.totalorder %v125_v11, 0  ;;  %v287_v41 = vadd.f32 %v286_v29, %v285_v14 }
  0xbb   :  { %v457_v18 = vsel %vm218_vm9, 1.0, %v569_v26  ;;  %vm217_vm12 = vmand %vm153_vm10, %vm169_vm11  ;;  %v270_v45 = vrot.slane %v269_v34, 1  ;;  %v261_v46 = vrot.slane %v260_v35, 1  ;;  %v279_v49 = vrot.slane %v278_v37, 1 }
  0xbc   :  { %v309_v21 = vsel %vm253_vm4, %v457_v18, 0.0  ;;  %v140_v22 = vpop.permute.xlu1 %139  ;;  %v136_v23 = vpop.permute.xlu0 %135  ;;  %v302_v25 = vrot.slane %v301_v17, 4  ;;  %v456_v28 = vsel %vm217_vm12, 1.0, %v569_v26  ;;  %v295_v31 = vrot.slane %v294_v16, 2 }
  0xbd   :  { %vm156_vm13 = vcmp.eq.s32.totalorder %v140_v22, %v618_v27  ;;  %v308_v30 = vsel %vm253_vm4, %v456_v28, 0.0  ;;  %vm172_vm14 = vcmp.ne.s32.totalorder %v140_v22, 0  ;;  %vm155_vm15 = vcmp.eq.s32.totalorder %v136_v23, %v618_v27 }
  0xbe   :  { %v303_v32 = vadd.f32 %v302_v25, %v301_v17  ;;  %v310_v33 = vadd.f32 %v309_v21, %v308_v30  ;;  %vm220_vm0 = vmand %vm156_vm13, %vm172_vm14  ;;  %vm171_vm3 = vcmp.ne.s32.totalorder %v136_v23, 0  ;;  %v296_v43 = vadd.f32 %v295_v31, %v294_v16 }
  0xbf   :  { %v459_v36 = vsel %vm220_vm0, 1.0, %v569_v26  ;;  %vm219_vm1 = vmand %vm155_vm15, %vm171_vm3  ;;  %v288_v51 = vrot.slane %v287_v41, 1  ;;  %v271_v55 = vadd.f32 %v270_v45, %v269_v34  ;;  %v262_v56 = vadd.f32 %v261_v46, %v260_v35 }
  0xc0   :  { %v304_v38 = vrot.slane %v303_v32, 2  ;;  %v311_v39 = vrot.slane %v310_v33, 4  ;;  %v318_v40 = vsel %vm253_vm4, %v459_v36, 0.0  ;;  %v458_v42 = vsel %vm219_vm1, 1.0, %v569_v26 }
  0xc1   :  { %v317_v44 = vsel %vm253_vm4, %v458_v42, 0.0  ;;  %v297_v53 = vrot.slane %v296_v43, 1  ;;  %v280_v26 = vadd.f32 %v279_v49, %v278_v37  ;;  %v289_v60 = vadd.f32 %v288_v51, %v287_v41 }
  0xc2   :  { %v312_v27 = vadd.f32 %v311_v39, %v310_v33  ;;  %v305_v47 = vadd.f32 %v304_v38, %v303_v32  ;;  %v319_v48 = vadd.f32 %v318_v40, %v317_v44  ;;  %vm337_vm5 = vcmask 1042434  }
  0xc3   :  { %v298_v62 = vadd.f32 %v297_v53, %v296_v43  ;;  %vm339_vm6 = vcmask 1043459   ;;  %v336_v63 = vsel %vm335_vm2, %v271_v55, %v262_v56  ;;  %vm341_vm7 = vcmask 1044484  }
  0xc4   :  { %v313_v50 = vrot.slane %v312_v27, 2  ;;  %v320_v52 = vrot.slane %v319_v48, 4  ;;  %v306_v57 = vrot.slane %v305_v47, 1  ;;  %v338_v3 = vsel %vm337_vm5, %v280_v26, %v336_v63 }
  0xc5   :  { %vm343_vm8 = vcmask 1045509   ;;  %v340_v5 = vsel %vm339_vm6, %v289_v60, %v338_v3  ;;  %vm345_vm9 = vcmask 1046534   ;;  %vm347_vm10 = vcmask 1047559  }
  0xc6   :  { %v314_v54 = vadd.f32 %v313_v50, %v312_v27  ;;  %v321_v58 = vadd.f32 %v320_v52, %v319_v48  ;;  %v307_v0 = vadd.f32 %v306_v57, %v305_v47  ;;  %v342_v6 = vsel %vm341_vm7, %v298_v62, %v340_v5 }
  0xc8   :  { %v315_v59 = vrot.slane %v314_v54, 1  ;;  %v322_v61 = vrot.slane %v321_v58, 2  ;;  %v344_v8 = vsel %vm343_vm8, %v307_v0, %v342_v6 }
  0xca   :  { %v323_v1 = vadd.f32 %v322_v61, %v321_v58  ;;  %v316_v2 = vadd.f32 %v315_v59, %v314_v54 }
  0xcc   :  { %v324_v4 = vrot.slane %v323_v1, 1  ;;  %v346_v9 = vsel %vm345_vm9, %v316_v2, %v344_v8 }
  0xce   :  { %v325_v7 = vadd.f32 %v324_v4, %v323_v1 }
  0xd0   :  { %v348_v10 = vsel %vm347_vm10, %v325_v7, %v346_v9 }
  0xd1   :  { %475 = vmatmul.mubr.msk.f32.vlgmr.msra.gmra.mrb[0].mxu0 %vm253_vm4, %v348_v10 }
 0x1a4   :  { %v417_v11 = vpop.f32.mrb[0].mxu0 }
 0x1a5   :  { %427 = vst [vmem:[#allocation8] sm:$0xff] %v417_v11  ;;  %v476_v12 = vpop.f32.mrb[1].mxu0 }
 0x1a6   :  { %546 = shalt.err (!%p543_p6)
}
 0x1a7   :  { %s547_s10 = scalar_lea.hbm %s683_s2, 128 }
 0x1a8   :  { %p548_p7 = scmp.ne.s32.totalorder %s683_s2, %s547_s10  ;;  %p551_p8 = scmp.lt.u32.totalorder %s547_s10, %s683_s2 }
 0x1aa   :  { %p553_p9 = pnand %p551_p8, %p548_p7 }
 0x1ac   :  { %556 = shalt.err (!%p553_p9)
}
 0x1ad   :  { %437 = dma.vmem_to_hbm [thread:$0]  %s435_s6, 128, %s683_s2, [#allocation5]  }
 0x1ae   :  { %561 = dma.done.wait [#allocation5], 128  }
 0x1af   :  { %562 = vsyncadd [#allocation5], 4294967168 }
 0x1b0   :  { %441 = vsyncpa [#allocation4], 1 }
 0x1b1   :  { %442 = vsyncpa [#allocation7], 1 }
 0x1b2   :  { %443 = vsyncpa [#allocation5], 1 }

</bundles_post_ra>
